<compile_context>
chip_gen: v7x
topology: tpu7x:2x2x1
jax: 0.10.0
libtpu: 0.0.40
codegen_flags: <defaults>
</compile_context>

<pallas_src>
import math

import jax
import jax.numpy as jnp
from jax.experimental import pallas as pl
from jax.experimental.pallas import tpu as pltpu


def _round_up(x, m):
    return (x + m - 1) // m * m


def _cdiv(a, b):
    return -(-a // b)


# --------------------------------------------------------------------------- kernel
def _autoencoder_kernel(x_ref, w1_ref, w2_ref, w3_ref, w4_ref, b_ref, out_ref):
    """Fused AE forward on one batch tile.

    Shapes:
      x_ref  : (TB, in_dim)            streamed in compute dtype (f32 or bf16)
      w1_ref : (in_dim, mid_p)
      w2_ref : (mid_p, C)   W2^T at cols [0:out_d],            zeros elsewhere
      w3_ref : (C, mid_p)   W3^T at rows [0:out_d],            zeros elsewhere
      w4_ref : (mid_p, C)   W4^T at cols [out_d:out_d+in_d],   zeros elsewhere
      b_ref  : (1, 2*mid_p + 2*C)  packed [b1 | b3 | b2pack | b4pack], f32
      out_ref: (TB, C)      packed [enc at 0:out_d | dec at out_d:out_d+in_d]
    """
    mid_p = w1_ref.shape[1]
    C = w2_ref.shape[1]
    cdt = w1_ref.dtype  # matmul input dtype (f32 or bf16)

    # packed biases; all offsets are multiples of 128 -> aligned lane slices
    b1 = b_ref[:, 0:mid_p]
    b3 = b_ref[:, mid_p:2 * mid_p]
    b2p = b_ref[:, 2 * mid_p:2 * mid_p + C]
    b4p = b_ref[:, 2 * mid_p + C:]

    x = x_ref[...].astype(cdt)  # no-op: x is already streamed in cdt

    # encoder: Linear -> tanh -> Linear   (f32 accumulation, f32 bias/tanh)
    h1 = jnp.tanh(jnp.dot(x, w1_ref[...], preferred_element_type=jnp.float32) + b1)
    enc = jnp.dot(h1.astype(cdt), w2_ref[...], preferred_element_type=jnp.float32) + b2p
    # enc: valid at lanes [0:out_d], exactly zero elsewhere.

    # decoder: Linear -> tanh -> Linear.  w3's rows >= out_d are zero, so the padded
    # lanes of enc contribute nothing.
    h2 = jnp.tanh(jnp.dot(enc.astype(cdt), w3_ref[...], preferred_element_type=jnp.float32) + b3)
    dec = jnp.dot(h2.astype(cdt), w4_ref[...], preferred_element_type=jnp.float32) + b4p
    # dec: valid at lanes [out_d:out_d+in_d], exactly zero elsewhere.

    # Disjoint valid lane ranges -> a single add packs [enc | dec] into one
    # lane-dense 128-aligned slab.  Single unmasked store stream.
    out_ref[...] = (enc + dec).astype(out_ref.dtype)


# --------------------------------------------------------------------------- wrapper
def prepare_params(params, *, compute_dtype=jnp.float32):
    """One-time prep: transpose to (in, out) layout, pad mid to a multiple of 128,
    and pack the encoder/decoder output weights+biases into a single C-wide column
    space (C = round_up(out_dim + in_dim, 128)), with W2/b2 at column 0 and
    W4/b4 at column out_dim.  Call once, reuse across forwards."""
    mid_dim, in_dim = params["W1"].shape         # W1: (mid, in)
    out_dim = params["W2"].shape[0]              # W2: (out, mid)
    mid_p = _round_up(mid_dim, 128)
    C = _round_up(out_dim + in_dim, 128)
    dec_off = out_dim
    cdt = jnp.dtype(compute_dtype)

    w1 = (jnp.zeros((in_dim, mid_p), cdt)
          .at[:, :mid_dim].set(params["W1"].T.astype(cdt)))
    w2 = (jnp.zeros((mid_p, C), cdt)
          .at[:mid_dim, :out_dim].set(params["W2"].T.astype(cdt)))
    w3 = (jnp.zeros((C, mid_p), cdt)
          .at[:out_dim, :mid_dim].set(params["W3"].T.astype(cdt)))
    w4 = (jnp.zeros((mid_p, C), cdt)
          .at[:mid_dim, dec_off:dec_off + in_dim].set(params["W4"].T.astype(cdt)))

    b1 = jnp.zeros((mid_p,), jnp.float32).at[:mid_dim].set(params["b1"].astype(jnp.float32))
    b3 = jnp.zeros((mid_p,), jnp.float32).at[:mid_dim].set(params["b3"].astype(jnp.float32))
    b2p = jnp.zeros((C,), jnp.float32).at[:out_dim].set(params["b2"].astype(jnp.float32))
    b4p = jnp.zeros((C,), jnp.float32).at[dec_off:dec_off + in_dim].set(params["b4"].astype(jnp.float32))
    b = jnp.concatenate([b1, b3, b2p, b4p]).reshape(1, -1)

    return dict(
        w1=w1, w2=w2, w3=w3, w4=w4, b=b,
        dims=(in_dim, mid_dim, out_dim),
        mid_p=mid_p, out_cols=C,
        x_dtype=cdt,
    )


def autoencoder_forward(x, prepared, *, tile_b=1024, min_grid_steps=4):
    """Fused AutoEncoder forward.  x: (B, in_dim) -> (encoded, decoded), f32."""
    B, in_dim = x.shape
    in_d, _, out_d = prepared["dims"]
    assert in_dim == in_d
    C = prepared["out_cols"]
    x_dtype = prepared["x_dtype"]
    sub = 16 if x_dtype == jnp.bfloat16 else 8   # sublane packing of the streamed x

    # Batch tile: as large as possible to amortize per-grid-step overhead, but keep
    # >= min_grid_steps steps (when B allows) so v7x can shard across its 2 TCs.
    tb = min(int(tile_b), _round_up(_cdiv(B, min_grid_steps), sub))
    tb = max(sub, _round_up(tb, sub))
    B_pad = _round_up(B, tb)

    # Only copy x when we must (ragged batch or dtype cast for the bf16 path);
    # feature dim is NOT padded -> no lane read amplification.
    if B_pad != B or x.dtype != x_dtype:
        x_in = jnp.zeros((B_pad, in_dim), x_dtype).at[:B].set(x.astype(x_dtype))
    else:
        x_in = x

    grid = (B_pad // tb,)

    def resident(arr):
        # full-array block, constant index -> fetched once, resident across all tiles
        nd = arr.ndim
        return pl.BlockSpec(arr.shape, lambda i, _nd=nd: (0,) * _nd)

    # VMEM budget check (only matters if the model dims grow, esp. on v7x 64 MiB).
    itemsize = jnp.dtype(x_dtype).itemsize
    vmem_est = 2 * tb * (in_dim * itemsize + C * 4)          # double-buffered x / out
    for name in ("w1", "w2", "w3", "w4", "b"):
        a = prepared[name]
        vmem_est += 2 * a.size * a.dtype.itemsize            # resident params (2 bufs)
    cparams = dict(dimension_semantics=("parallel",))
    if vmem_est > 32 * 1024 * 1024:
        cparams["vmem_limit_bytes"] = int(vmem_est + (8 << 20))

    packed = pl.pallas_call(
        _autoencoder_kernel,
        out_shape=jax.ShapeDtypeStruct((B_pad, C), jnp.float32),
        grid_spec=pltpu.PrefetchScalarGridSpec(
            num_scalar_prefetch=0,
            grid=grid,
            in_specs=[
                pl.BlockSpec((tb, in_dim), lambda i: (i, 0)),   # last dim == full dim
                resident(prepared["w1"]),
                resident(prepared["w2"]),
                resident(prepared["w3"]),
                resident(prepared["w4"]),
                resident(prepared["b"]),
            ],
            out_specs=pl.BlockSpec((tb, C), lambda i: (i, 0)),  # lane-dense 128-aligned
        ),
        compiler_params=pltpu.CompilerParams(**cparams),
    )(x_in, prepared["w1"], prepared["w2"], prepared["w3"], prepared["w4"], prepared["b"])

    enc = packed[:B, :out_d]
    dec = packed[:B, out_d:out_d + in_d]
    return enc, dec


# --------------------------------------------------------------------------- reference / init
def init_autoencoder_params(key, in_dim, out_dim):
    """PyTorch-default Linear init; weights in PyTorch layout (out_feat, in_feat)."""
    mid_dim = math.ceil(math.sqrt(in_dim * out_dim))
    ks = jax.random.split(key, 8)

    def lin(kw, kb, fan_in, fan_out):
        bound = 1.0 / math.sqrt(fan_in)
        W = jax.random.uniform(kw, (fan_out, fan_in), jnp.float32, -bound, bound)
        b = jax.random.uniform(kb, (fan_out,), jnp.float32, -bound, bound)
        return W, b

    W1, b1 = lin(ks[0], ks[1], in_dim, mid_dim)
    W2, b2 = lin(ks[2], ks[3], mid_dim, out_dim)
    W3, b3 = lin(ks[4], ks[5], out_dim, mid_dim)
    W4, b4 = lin(ks[6], ks[7], mid_dim, in_dim)
    return dict(W1=W1, b1=b1, W2=W2, b2=b2, W3=W3, b3=b3, W4=W4, b4=b4)


def autoencoder_ref(x, p):
    """Pure-JAX reference matching the PyTorch forward exactly."""
    h1 = jnp.tanh(x @ p["W1"].T + p["b1"])
    enc = h1 @ p["W2"].T + p["b2"]
    h2 = jnp.tanh(enc @ p["W3"].T + p["b3"])
    dec = h2 @ p["W4"].T + p["b4"]
    return enc, dec


# --------------------------------------------------------------------------- test
if __name__ == "__main__":
    key = jax.random.PRNGKey(0)
    k_x, k_p = jax.random.split(key)

    in_dim, out_dim = 32, 8                     # mid_dim = ceil(sqrt(256)) = 16
    params = init_autoencoder_params(k_p, in_dim, out_dim)

    # f32 path (exact): single-tile batch (no wrapper copy) + ragged multi-tile batch
    prep_f32 = prepare_params(params)
    for B in (8, 300):
        x = jax.random.normal(jax.random.fold_in(k_x, B), (B, in_dim), jnp.float32)
        enc, dec = autoencoder_forward(x, prep_f32)
        enc = jax.block_until_ready(enc)
        dec = jax.block_until_ready(dec)
        enc_r, dec_r = autoencoder_ref(x, params)
        assert enc.shape == (B, out_dim) and dec.shape == (B, in_dim)
        assert jnp.allclose(enc, enc_r, atol=5e-5, rtol=5e-5)
        assert jnp.allclose(dec, dec_r, atol=5e-5, rtol=5e-5)

    # bf16 path (v6e/v7x MXU, halved x/weight DMA bytes), looser tolerance
    prep_bf16 = prepare_params(params, compute_dtype=jnp.bfloat16)
    x = jax.random.normal(k_x, (64, in_dim), jnp.float32)
    enc, dec = autoencoder_forward(x, prep_bf16)
    enc = jax.block_until_ready(enc)
    dec = jax.block_until_ready(dec)
    enc_r, dec_r = autoencoder_ref(x, params)
    assert jnp.allclose(enc, enc_r, atol=5e-2, rtol=5e-2)
    assert jnp.allclose(dec, dec_r, atol=5e-2, rtol=5e-2)

    print("KERNEL_OK")
</pallas_src>

<mosaic_0001>
module attributes {stable_mosaic.version = 11 : i64} {
  func.func @_autoencoder_kernel(%arg0: i32, %arg1: memref<8x32xf32, #tpu.memory_space<vmem>>, %arg2: memref<32x128xf32, #tpu.memory_space<vmem>>, %arg3: memref<128x128xf32, #tpu.memory_space<vmem>>, %arg4: memref<128x128xf32, #tpu.memory_space<vmem>>, %arg5: memref<128x128xf32, #tpu.memory_space<vmem>>, %arg6: memref<1x512xf32, #tpu.memory_space<vmem>>, %arg7: memref<8x128xf32, #tpu.memory_space<vmem>>) attributes {dimension_semantics = [#tpu.dimension_semantics<parallel>], iteration_bounds = array<i64: 1>, scalar_prefetch = 0 : i64, scratch_operands = 0 : i64, tpu.core_type = #tpu.core_type<tc>, window_params = [{transform_indices = @transform_0, window_bounds = array<i64: 8, 32>}, {pipeline_mode = #tpu.pipeline_mode<synchronous>, transform_indices = @transform_1, window_bounds = array<i64: 32, 128>}, {pipeline_mode = #tpu.pipeline_mode<synchronous>, transform_indices = @transform_2, window_bounds = array<i64: 128, 128>}, {pipeline_mode = #tpu.pipeline_mode<synchronous>, transform_indices = @transform_3, window_bounds = array<i64: 128, 128>}, {pipeline_mode = #tpu.pipeline_mode<synchronous>, transform_indices = @transform_4, window_bounds = array<i64: 128, 128>}, {pipeline_mode = #tpu.pipeline_mode<synchronous>, transform_indices = @transform_5, window_bounds = array<i64: 1, 512>}, {transform_indices = @transform_6, window_bounds = array<i64: 8, 128>}]} {
    %c0 = arith.constant 0 : index
    %c0_0 = arith.constant 0 : index
    %0 = vector.load %arg6[%c0, %c0_0] : memref<1x512xf32, #tpu.memory_space<vmem>>, vector<1x128xf32>
    %c0_1 = arith.constant 0 : index
    %c128 = arith.constant 128 : index
    %1 = vector.load %arg6[%c0_1, %c128] : memref<1x512xf32, #tpu.memory_space<vmem>>, vector<1x128xf32>
    %c0_2 = arith.constant 0 : index
    %c256 = arith.constant 256 : index
    %2 = vector.load %arg6[%c0_2, %c256] : memref<1x512xf32, #tpu.memory_space<vmem>>, vector<1x128xf32>
    %c0_3 = arith.constant 0 : index
    %c384 = arith.constant 384 : index
    %3 = vector.load %arg6[%c0_3, %c384] : memref<1x512xf32, #tpu.memory_space<vmem>>, vector<1x128xf32>
    %c0_4 = arith.constant 0 : index
    %c0_5 = arith.constant 0 : index
    %4 = vector.load %arg1[%c0_4, %c0_5] : memref<8x32xf32, #tpu.memory_space<vmem>>, vector<8x32xf32>
    %c0_6 = arith.constant 0 : index
    %c0_7 = arith.constant 0 : index
    %5 = vector.load %arg2[%c0_6, %c0_7] : memref<32x128xf32, #tpu.memory_space<vmem>>, vector<32x128xf32>
    %cst = arith.constant dense<0.000000e+00> : vector<8x128xf32>
    %6 = tpu.matmul %4, %5, %cst {dimension_numbers = #tpu.dot_dimension_numbers<[1], [0], [0], [1], [0, 0, 1, 1], [], []>} : vector<8x32xf32>, vector<32x128xf32>, vector<8x128xf32> -> vector<8x128xf32>
    %7 = vector.broadcast %0 : vector<1x128xf32> to vector<8x128xf32>
    %8 = arith.addf %6, %7 : vector<8x128xf32>
    %9 = math.tanh %8 : vector<8x128xf32>
    %c0_8 = arith.constant 0 : index
    %c0_9 = arith.constant 0 : index
    %10 = vector.load %arg3[%c0_8, %c0_9] : memref<128x128xf32, #tpu.memory_space<vmem>>, vector<128x128xf32>
    %cst_10 = arith.constant dense<0.000000e+00> : vector<8x128xf32>
    %11 = tpu.matmul %9, %10, %cst_10 {dimension_numbers = #tpu.dot_dimension_numbers<[1], [0], [0], [1], [0, 0, 1, 1], [], []>} : vector<8x128xf32>, vector<128x128xf32>, vector<8x128xf32> -> vector<8x128xf32>
    %12 = vector.broadcast %2 : vector<1x128xf32> to vector<8x128xf32>
    %13 = arith.addf %11, %12 : vector<8x128xf32>
    %c0_11 = arith.constant 0 : index
    %c0_12 = arith.constant 0 : index
    %14 = vector.load %arg4[%c0_11, %c0_12] : memref<128x128xf32, #tpu.memory_space<vmem>>, vector<128x128xf32>
    %cst_13 = arith.constant dense<0.000000e+00> : vector<8x128xf32>
    %15 = tpu.matmul %13, %14, %cst_13 {dimension_numbers = #tpu.dot_dimension_numbers<[1], [0], [0], [1], [0, 0, 1, 1], [], []>} : vector<8x128xf32>, vector<128x128xf32>, vector<8x128xf32> -> vector<8x128xf32>
    %16 = vector.broadcast %1 : vector<1x128xf32> to vector<8x128xf32>
    %17 = arith.addf %15, %16 : vector<8x128xf32>
    %18 = math.tanh %17 : vector<8x128xf32>
    %c0_14 = arith.constant 0 : index
    %c0_15 = arith.constant 0 : index
    %19 = vector.load %arg5[%c0_14, %c0_15] : memref<128x128xf32, #tpu.memory_space<vmem>>, vector<128x128xf32>
    %cst_16 = arith.constant dense<0.000000e+00> : vector<8x128xf32>
    %20 = tpu.matmul %18, %19, %cst_16 {dimension_numbers = #tpu.dot_dimension_numbers<[1], [0], [0], [1], [0, 0, 1, 1], [], []>} : vector<8x128xf32>, vector<128x128xf32>, vector<8x128xf32> -> vector<8x128xf32>
    %21 = vector.broadcast %3 : vector<1x128xf32> to vector<8x128xf32>
    %22 = arith.addf %20, %21 : vector<8x128xf32>
    %23 = arith.addf %13, %22 : vector<8x128xf32>
    %c0_17 = arith.constant 0 : index
    %c0_18 = arith.constant 0 : index
    %24 = vector.load %arg7[%c0_17, %c0_18] : memref<8x128xf32, #tpu.memory_space<vmem>>, vector<8x128xf32>
    tpu.vector_store %arg7[%c0_17, %c0_18], %23 {strides = array<i32>} : memref<8x128xf32, #tpu.memory_space<vmem>>, vector<8x128xf32>,
    return
  }
  func.func @transform_0(%arg0: i32) -> (i32, i32) {
    %c0_i32 = arith.constant 0 : i32
    %c0_i32_0 = arith.constant 0 : i32
    return %arg0, %c0_i32 : i32, i32
  }
  func.func @transform_1(%arg0: i32) -> (i32, i32) {
    %c0_i32 = arith.constant 0 : i32
    %c0_i32_0 = arith.constant 0 : i32
    %c0_i32_1 = arith.constant 0 : i32
    return %c0_i32, %c0_i32_0 : i32, i32
  }
  func.func @transform_2(%arg0: i32) -> (i32, i32) {
    %c0_i32 = arith.constant 0 : i32
    %c0_i32_0 = arith.constant 0 : i32
    %c0_i32_1 = arith.constant 0 : i32
    return %c0_i32, %c0_i32_0 : i32, i32
  }
  func.func @transform_3(%arg0: i32) -> (i32, i32) {
    %c0_i32 = arith.constant 0 : i32
    %c0_i32_0 = arith.constant 0 : i32
    %c0_i32_1 = arith.constant 0 : i32
    return %c0_i32, %c0_i32_0 : i32, i32
  }
  func.func @transform_4(%arg0: i32) -> (i32, i32) {
    %c0_i32 = arith.constant 0 : i32
    %c0_i32_0 = arith.constant 0 : i32
    %c0_i32_1 = arith.constant 0 : i32
    return %c0_i32, %c0_i32_0 : i32, i32
  }
  func.func @transform_5(%arg0: i32) -> (i32, i32) {
    %c0_i32 = arith.constant 0 : i32
    %c0_i32_0 = arith.constant 0 : i32
    %c0_i32_1 = arith.constant 0 : i32
    return %c0_i32, %c0_i32_0 : i32, i32
  }
  func.func @transform_6(%arg0: i32) -> (i32, i32) {
    %c0_i32 = arith.constant 0 : i32
    %c0_i32_0 = arith.constant 0 : i32
    return %arg0, %c0_i32 : i32, i32
  }
}

</mosaic_0001>

<bundles_post_ra>
// kernel: tpu_custom_call.1
= control target key start
LH: loop header
LB: loop body
LE: loop exit
PB: predicated region body
PF: predicated region fallthrough
CT: control target
= control target key end

     0   :  { %11 = vsyncpa [#allocation3], 0  ;;  %s1062_s0 = inlined_call_operand.hbm [shape: f32[8,32], index: 0, kind: input, shape index: {}]   ;;  %s1063_s1 = inlined_call_operand.hbm [shape: f32[32,128], index: 1, kind: input, shape index: {}]   ;;  %s1064_s2 = inlined_call_operand.hbm [shape: f32[128,128], index: 2, kind: input, shape index: {}]   ;;  %s1065_s3 = inlined_call_operand.hbm [shape: f32[128,128], index: 3, kind: input, shape index: {}]   ;;  %s1066_s4 = inlined_call_operand.hbm [shape: f32[128,128], index: 4, kind: input, shape index: {}]   ;;  %s1067_s5 = inlined_call_operand.vmem [shape: f32[1,512], index: 5, kind: input, shape index: {}]   ;;  %s1068_s6 = inlined_call_operand.hbm [shape: f32[8,128], index: 6, kind: output, shape index: {}]  }
   0x1   :  { %12 = vsyncpa [#allocation6], 0 }
   0x2   :  { %13 = vsyncpa [#allocation9], 0 }
   0x3   :  { %14 = vsyncpa [#allocation4], 0  ;;  %s886_s21 = smov [#allocation5]   ;;  %s746_s25 = scalar_lea.hbm %s1063_s1, 512 }
   0x4   :  { %s30_s22 = sshll.u32 %s886_s21, 4  ;;  %p747_p0 = scmp.ne.s32.totalorder %s1063_s1, %s746_s25  ;;  %s31_s22 = int_to_ptr.vmem [resolvable:$true] %s30_s22 }
   0x5   :  { %p750_p1 = scmp.lt.u32.totalorder %s746_s25, %s1063_s1 }
   0x7   :  { %p752_p2 = pnand %p750_p1, %p747_p0 }
   0x9   :  { %755 = shalt.err (!%p752_p2)
}
   0xa   :  { %s756_s30 = scalar_lea.vmem %s31_s22, 512  ;;  %p761_p4 = scmp.lt.s32.totalorder %s31_s22, %s31_s22 }
   0xb   :  { %p757_p3 = scmp.ne.s32.totalorder %s31_s22, %s756_s30  ;;  %p762_p5 = scmp.lt.s32.totalorder %s756_s30, %s756_s30 }
   0xd   :  { %p763_p6 = por %p762_p5, %p761_p4 }
   0xf   :  { %p764_p7 = pnand %p763_p6, %p757_p3 }
  0x11   :  { %767 = shalt.err (!%p764_p7)
}
  0x12   :  { %s887_s7 = smov 128   ;;  %s888_s8 = smov 8  }
  0x13   :  { %36 = dma.hbm_to_vmem [thread:$0]  %s1063_s1, 512, %s31_s22, [#allocation6], %s887_s7, %s887_s7, %s888_s8  }
  0x14   :  { %s889_s11 = smov [#allocation8]   ;;  %s890_s13 = smov [#allocation2]  }
  0x15   :  { %s54_s12 = sshll.u32 %s889_s11, 4  ;;  %s21_s14 = sshll.u32 %s890_s13, 4  ;;  %s55_s12 = int_to_ptr.vmem [resolvable:$true] %s54_s12  ;;  %s22_s14 = int_to_ptr.vmem [resolvable:$true] %s21_s14 }
  0x16   :  { %s768_s17 = scalar_lea.hbm %s1065_s3, 2048 }
  0x17   :  { %p769_p8 = scmp.ne.s32.totalorder %s1065_s3, %s768_s17  ;;  %p772_p9 = scmp.lt.u32.totalorder %s768_s17, %s1065_s3 }
  0x19   :  { %p774_p10 = pnand %p772_p9, %p769_p8 }
  0x1b   :  { %777 = shalt.err (!%p774_p10)
}
  0x1c   :  { %s778_s1 = scalar_lea.vmem %s55_s12, 2048  ;;  %p783_p12 = scmp.lt.s32.totalorder %s55_s12, %s55_s12 }
  0x1d   :  { %p779_p11 = scmp.ne.s32.totalorder %s55_s12, %s778_s1  ;;  %p784_p13 = scmp.lt.s32.totalorder %s778_s1, %s778_s1 }
  0x1f   :  { %p785_p0 = por %p784_p13, %p783_p12 }
  0x21   :  { %p786_p1 = pnand %p785_p0, %p779_p11 }
  0x23   :  { %789 = shalt.err (!%p786_p1)
}
  0x24   :  { %60 = dma.hbm_to_vmem [thread:$0]  %s1065_s3, 2048, %s55_s12, [#allocation9], %s887_s7, %s887_s7, %s888_s8  }
  0x25   :  { %s790_s26 = scalar_lea.hbm %s1062_s0, 128 }
  0x26   :  { %p791_p2 = scmp.ne.s32.totalorder %s1062_s0, %s790_s26  ;;  %p794_p3 = scmp.lt.u32.totalorder %s790_s26, %s1062_s0 }
  0x28   :  { %p796_p4 = pnand %p794_p3, %p791_p2 }
  0x2a   :  { %799 = shalt.err (!%p796_p4)
}
  0x2b   :  { %s800_s9 = scalar_lea.vmem %s22_s14, 128  ;;  %p805_p6 = scmp.lt.s32.totalorder %s22_s14, %s22_s14 }
  0x2c   :  { %p801_p5 = scmp.ne.s32.totalorder %s22_s14, %s800_s9  ;;  %p806_p7 = scmp.lt.s32.totalorder %s800_s9, %s800_s9 }
  0x2e   :  { %p807_p8 = por %p806_p7, %p805_p6 }
  0x30   :  { %p808_p9 = pnand %p807_p8, %p801_p5 }
  0x32   :  { %811 = shalt.err (!%p808_p9)
}
  0x33   :  { %24 = dma.hbm_to_vmem [thread:$0]  %s1062_s0, 128, %s22_s14, [#allocation3]  }
  0x34   :  { %s891_s11 = smov [#allocation7]   ;;  %s892_s13 = smov [#allocation10]  }
  0x35   :  { %s42_s12 = sshll.u32 %s891_s11, 4  ;;  %s66_s15 = sshll.u32 %s892_s13, 4  ;;  %s43_s12 = int_to_ptr.vmem [resolvable:$true] %s42_s12  ;;  %s67_s15 = int_to_ptr.vmem [resolvable:$true] %s66_s15 }
  0x36   :  { %s812_s18 = scalar_lea.hbm %s1064_s2, 2048 }
  0x37   :  { %p813_p10 = scmp.ne.s32.totalorder %s1064_s2, %s812_s18  ;;  %p816_p11 = scmp.lt.u32.totalorder %s812_s18, %s1064_s2 }
  0x39   :  { %p818_p12 = pnand %p816_p11, %p813_p10 }
  0x3b   :  { %821 = shalt.err (!%p818_p12)
}
  0x3c   :  { %s822_s0 = scalar_lea.vmem %s43_s12, 2048  ;;  %p827_p0 = scmp.lt.s32.totalorder %s43_s12, %s43_s12 }
  0x3d   :  { %p823_p13 = scmp.ne.s32.totalorder %s43_s12, %s822_s0  ;;  %p828_p1 = scmp.lt.s32.totalorder %s822_s0, %s822_s0 }
  0x3f   :  { %p829_p2 = por %p828_p1, %p827_p0 }
  0x41   :  { %p830_p3 = pnand %p829_p2, %p823_p13 }
  0x43   :  { %833 = shalt.err (!%p830_p3)
}
  0x44   :  { %48 = dma.hbm_to_vmem [thread:$0]  %s1064_s2, 2048, %s43_s12, [#allocation6], %s887_s7, %s887_s7, %s888_s8  }
  0x45   :  { %s834_s25 = scalar_lea.hbm %s1066_s4, 2048 }
  0x46   :  { %p835_p4 = scmp.ne.s32.totalorder %s1066_s4, %s834_s25  ;;  %p838_p5 = scmp.lt.u32.totalorder %s834_s25, %s1066_s4 }
  0x48   :  { %p840_p6 = pnand %p838_p5, %p835_p4 }
  0x4a   :  { %843 = shalt.err (!%p840_p6)
}
  0x4b   :  { %s844_s30 = scalar_lea.vmem %s67_s15, 2048  ;;  %p849_p8 = scmp.lt.s32.totalorder %s67_s15, %s67_s15 }
  0x4c   :  { %p845_p7 = scmp.ne.s32.totalorder %s67_s15, %s844_s30  ;;  %p850_p9 = scmp.lt.s32.totalorder %s844_s30, %s844_s30 }
  0x4e   :  { %p851_p10 = por %p850_p9, %p849_p8 }
  0x50   :  { %p852_p11 = pnand %p851_p10, %p845_p7 }
  0x52   :  { %855 = shalt.err (!%p852_p11)
}
  0x53   :  { %72 = dma.hbm_to_vmem [thread:$0]  %s1066_s4, 2048, %s67_s15, [#allocation9], %s887_s7, %s887_s7, %s888_s8  }
  0x54   :  { %878 = dma.done.wait [#allocation3], 128  }
  0x55   :  { %879 = vsyncadd [#allocation3], 4294967168 }
  0x56   :  { %880 = dma.done.wait [#allocation6], 2560  }
  0x57   :  { %881 = vsyncadd [#allocation6], 4294964736 }
  0x58   :  { %882 = dma.done.wait [#allocation9], 4096  }
  0x59   :  { %883 = vsyncadd [#allocation9], 4294963200  ;;  %v893_v0 = vmov 0.0|0.0   ;;  %vm894_vm0 = vmmov 0   ;;  %v895_v1 = vmov 0.0   ;;  %v95_v2 = vld [vmem:[#allocation5] sm:$0xff] }
  0x5a   :  { %653 = vmatprep.subr.bf16.mxu0 %v893_v0  ;;  %545 = vmatprep.mubr.msk.f32.mxu0 %vm894_vm0, %v895_v1  ;;  %v96_v3 = vld [vmem:[#allocation5 + $0x8] sm:$0xff]  ;;  %v97_v4 = vld [vmem:[#allocation5 + $0x10] sm:$0xff]  ;;  %v98_v6 = vld [vmem:[#allocation5 + $0x18] sm:$0xff]  ;;  %vm105_vm1 = vcmask 261120   ;;  %s896_s15 = smov [#allocation11]  }
  0x5b   :  { %659 = vmatprep.subr.bf16.mxu1 %v893_v0  ;;  %580 = vmatprep.mubr.msk.f32.mxu1 %vm894_vm0, %v895_v1  ;;  %v654_v5 = vpack.c.bf16 %v96_v3, %v95_v2  ;;  %v180_v7 = vld [vmem:[#allocation7] sm:$0xff]  ;;  %v181_v8 = vld [vmem:[#allocation7 + $0x8] sm:$0xff]  ;;  %v182_v9 = vld [vmem:[#allocation7 + $0x10] sm:$0xff]  ;;  %v657_v11 = vpack.c.bf16 %v98_v6, %v97_v4  ;;  %s465_s16 = sshll.u32 %s896_s15, 4  ;;  %s466_s16 = int_to_ptr.vmem [resolvable:$true] %s465_s16 }
  0x5c   :  { %v183_v10 = vld [vmem:[#allocation7 + $0x18] sm:$0xff]  ;;  %v660_v12 = vpack.c.bf16 %v181_v8, %v180_v7  ;;  %v184_v14 = vld [vmem:[#allocation7 + $0x20] sm:$0xff]  ;;  %v185_v15 = vld [vmem:[#allocation7 + $0x28] sm:$0xff]  ;;  %s856_s17 = scalar_lea.vmem %s466_s16, 128  ;;  %p861_p13 = scmp.lt.s32.totalorder %s466_s16, %s466_s16 }
  0x5d   :  { %655 = vmatpush3.bf16.msra.mxu0 %v654_v5  ;;  %v663_v13 = vpack.c.bf16 %v183_v10, %v182_v9  ;;  %v94_v16 = vld [vmem:[#allocation2] sm:$0xff]  ;;  %v666_v17 = vpack.c.bf16 %v185_v15, %v184_v14  ;;  %v186_v18 = vld [vmem:[#allocation7 + $0x30] sm:$0xff]  ;;  %v188_v21 = vld [vmem:[#allocation7 + $0x40] sm:$0xff]  ;;  %p857_p12 = scmp.ne.s32.totalorder %s466_s16, %s856_s17  ;;  %p862_p0 = scmp.lt.s32.totalorder %s856_s17, %s856_s17 }
  0x5e   :  { %656 = vmatprep.subr.bf16.mxu0 %v893_v0  ;;  %661 = vmatpush3.bf16.msra.mxu1 %v660_v12  ;;  %v187_v19 = vld [vmem:[#allocation7 + $0x38] sm:$0xff]  ;;  %v189_v22 = vld [vmem:[#allocation7 + $0x48] sm:$0xff]  ;;  %v190_v24 = vld [vmem:[#allocation7 + $0x50] sm:$0xff] }
  0x5f   :  { %662 = vmatprep.subr.bf16.mxu1 %v893_v0  ;;  %v669_v20 = vpack.c.bf16 %v187_v19, %v186_v18  ;;  %v672_v23 = vpack.c.bf16 %v189_v22, %v188_v21  ;;  %v191_v25 = vld [vmem:[#allocation7 + $0x58] sm:$0xff]  ;;  %v192_v27 = vld [vmem:[#allocation7 + $0x60] sm:$0xff]  ;;  %v193_v28 = vld [vmem:[#allocation7 + $0x68] sm:$0xff]  ;;  %p863_p1 = por %p862_p0, %p861_p13 }
  0x60   :  { %v675_v26 = vpack.c.bf16 %v191_v25, %v190_v24  ;;  %v678_v29 = vpack.c.bf16 %v193_v28, %v192_v27  ;;  %v194_v30 = vld [vmem:[#allocation7 + $0x70] sm:$0xff]  ;;  %v195_v31 = vld [vmem:[#allocation7 + $0x78] sm:$0xff]  ;;  %v272_v33 = vld [vmem:[#allocation8] sm:$0xff] }
  0x61   :  { %658 = vmatpush3.bf16.msra.mxu0 %v657_v11  ;;  %v681_v32 = vpack.c.bf16 %v195_v31, %v194_v30  ;;  %v273_v34 = vld [vmem:[#allocation8 + $0x8] sm:$0xff]  ;;  %v274_v35 = vld [vmem:[#allocation8 + $0x10] sm:$0xff]  ;;  %v275_v37 = vld [vmem:[#allocation8 + $0x18] sm:$0xff]  ;;  %p864_p2 = pnand %p863_p1, %p857_p12 }
  0x62   :  { %683 = vmatprep.subr.bf16.mxu0 %v893_v0  ;;  %664 = vmatpush3.bf16.msra.mxu1 %v663_v13  ;;  %v684_v36 = vpack.c.bf16 %v273_v34, %v272_v33  ;;  %v687_v38 = vpack.c.bf16 %v275_v37, %v274_v35  ;;  %v276_v39 = vld [vmem:[#allocation8 + $0x20] sm:$0xff]  ;;  %v277_v40 = vld [vmem:[#allocation8 + $0x28] sm:$0xff]  ;;  %v278_v42 = vld [vmem:[#allocation8 + $0x30] sm:$0xff] }
  0x63   :  { %665 = vmatprep.subr.bf16.mxu1 %v893_v0  ;;  %v690_v41 = vpack.c.bf16 %v277_v40, %v276_v39  ;;  %v279_v43 = vld [vmem:[#allocation8 + $0x38] sm:$0xff]  ;;  %v280_v45 = vld [vmem:[#allocation8 + $0x40] sm:$0xff]  ;;  %v281_v46 = vld [vmem:[#allocation8 + $0x48] sm:$0xff] }
  0x64   :  { %546 = vmatmul.mubr.msk.f32.vlgmr.msra.gmra.mrb[0].mxu0 %vm105_vm1, %v94_v16  ;;  %v693_v44 = vpack.c.bf16 %v279_v43, %v278_v42  ;;  %v696_v47 = vpack.c.bf16 %v281_v46, %v280_v45  ;;  %v282_v48 = vld [vmem:[#allocation8 + $0x50] sm:$0xff]  ;;  %v283_v49 = vld [vmem:[#allocation8 + $0x58] sm:$0xff]  ;;  %v284_v51 = vld [vmem:[#allocation8 + $0x60] sm:$0xff] }
  0x65   :  { %615 = vmatprep.mubr.msk.f32.mxu0 %vm894_vm0, %v895_v1  ;;  %685 = vmatpush3.bf16.msra.mxu0 %v684_v36  ;;  %v699_v50 = vpack.c.bf16 %v283_v49, %v282_v48  ;;  %v285_v52 = vld [vmem:[#allocation8 + $0x68] sm:$0xff]  ;;  %v476_v54 = vld [vmem:[%s1067_s5] ss:$0 sm:$0xff]  ;;  %v286_v59 = vld [vmem:[#allocation8 + $0x70] sm:$0xff] }
  0x66   :  { %667 = vmatpush3.bf16.msra.mxu1 %v666_v17  ;;  %686 = vmatprep.subr.bf16.mxu0 %v893_v0  ;;  %v702_v53 = vpack.c.bf16 %v285_v52, %v284_v51  ;;  %v287_v60 = vld [vmem:[#allocation8 + $0x78] sm:$0xff]  ;;  %v365_v62 = vld [vmem:[#allocation10] sm:$0xff]  ;;  %v366_v63 = vld [vmem:[#allocation10 + $0x8] sm:$0xff] }
  0x67   :  { %668 = vmatprep.subr.bf16.mxu1 %v893_v0  ;;  %v705_v61 = vpack.c.bf16 %v287_v60, %v286_v59  ;;  %v367_v2 = vld [vmem:[#allocation10 + $0x10] sm:$0xff]  ;;  %v708_v3 = vpack.c.bf16 %v366_v63, %v365_v62  ;;  %v368_v4 = vld [vmem:[#allocation10 + $0x18] sm:$0xff]  ;;  %v369_v6 = vld [vmem:[#allocation10 + $0x20] sm:$0xff] }
  0x68   :  { %v711_v5 = vpack.c.bf16 %v368_v4, %v367_v2  ;;  %v370_v7 = vld [vmem:[#allocation10 + $0x28] sm:$0xff]  ;;  %v372_v9 = vld [vmem:[#allocation10 + $0x38] sm:$0xff]  ;;  %v373_v11 = vld [vmem:[#allocation10 + $0x40] sm:$0xff] }
  0x69   :  { %688 = vmatpush3.bf16.msra.mxu0 %v687_v38  ;;  %v714_v8 = vpack.c.bf16 %v370_v7, %v369_v6  ;;  %v374_v12 = vld [vmem:[#allocation10 + $0x48] sm:$0xff]  ;;  %v478_v14 = vld [vmem:[%s1067_s5 + $0x2] ss:$0 sm:$0xff]  ;;  %v375_v18 = vld [vmem:[#allocation10 + $0x50] sm:$0xff] }
  0x6a   :  { %670 = vmatpush3.bf16.msra.mxu1 %v669_v20  ;;  %689 = vmatprep.subr.bf16.mxu0 %v893_v0  ;;  %v720_v13 = vpack.c.bf16 %v374_v12, %v373_v11  ;;  %v376_v19 = vld [vmem:[#allocation10 + $0x58] sm:$0xff]  ;;  %v377_v21 = vld [vmem:[#allocation10 + $0x60] sm:$0xff]  ;;  %v378_v22 = vld [vmem:[#allocation10 + $0x68] sm:$0xff] }
  0x6b   :  { %671 = vmatprep.subr.bf16.mxu1 %v893_v0  ;;  %v723_v20 = vpack.c.bf16 %v376_v19, %v375_v18  ;;  %v379_v24 = vld [vmem:[#allocation10 + $0x70] sm:$0xff]  ;;  %v380_v25 = vld [vmem:[#allocation10 + $0x78] sm:$0xff] }
  0x6c   :  { %v479_v27 = vld [vmem:[%s1067_s5 + $0x1] ss:$0 sm:$0xff] }
  0x6d   :  { %691 = vmatpush3.bf16.msra.mxu0 %v690_v41 }
  0x6e   :  { %673 = vmatpush3.bf16.msra.mxu1 %v672_v23  ;;  %692 = vmatprep.subr.bf16.mxu0 %v893_v0  ;;  %v726_v23 = vpack.c.bf16 %v378_v22, %v377_v21 }
  0x6f   :  { %674 = vmatprep.subr.bf16.mxu1 %v893_v0 }
  0x71   :  { %694 = vmatpush3.bf16.msra.mxu0 %v693_v44 }
  0x72   :  { %676 = vmatpush3.bf16.msra.mxu1 %v675_v26  ;;  %695 = vmatprep.subr.bf16.mxu0 %v893_v0  ;;  %v729_v26 = vpack.c.bf16 %v380_v25, %v379_v24 }
  0x73   :  { %677 = vmatprep.subr.bf16.mxu1 %v893_v0 }
  0x75   :  { %697 = vmatpush3.bf16.msra.mxu0 %v696_v47 }
  0x76   :  { %679 = vmatpush3.bf16.msra.mxu1 %v678_v29  ;;  %698 = vmatprep.subr.bf16.mxu0 %v893_v0 }
  0x77   :  { %680 = vmatprep.subr.bf16.mxu1 %v893_v0 }
  0x79   :  { %700 = vmatpush3.bf16.msra.mxu0 %v699_v50 }
  0x7a   :  { %682 = vmatpush3.bf16.msra.mxu1 %v681_v32  ;;  %701 = vmatprep.subr.bf16.mxu0 %v893_v0  ;;  %v480_v32 = vld [vmem:[%s1067_s5 + $0x3] ss:$0 sm:$0xff] }
  0x7b   :  { %707 = vmatprep.subr.bf16.mxu1 %v893_v0 }
  0x7d   :  { %703 = vmatpush3.bf16.msra.mxu0 %v702_v53 }
  0x7e   :  { %704 = vmatprep.subr.bf16.mxu0 %v893_v0 }
  0x81   :  { %706 = vmatpush3.bf16.msra.mxu0 %v705_v61 }
 0x137   :  { %v175_v55 = vpop.f32.mrb[0].mxu0 }
 0x138   :  { %v176_v56 = vadd.f32 %v476_v54, %v175_v55  ;;  %v547_v57 = vpop.f32.mrb[1].mxu0 }
 0x13a   :  { %742 = vtanh.f32 %v176_v56 }
 0x144   :  { %v743_v58 = vpop.eup %742 }
 0x145   :  { %581 = vmatmul.mubr.f32.vlgmr.msra.gmra.mrb[0].mxu1 %v743_v58 }
 0x146   :  { %650 = vmatprep.mubr.msk.f32.mxu1 %vm894_vm0, %v895_v1  ;;  %709 = vmatpush3.bf16.msra.mxu1 %v708_v3  ;;  %v371_v1 = vld [vmem:[#allocation10 + $0x30] sm:$0xff] }
 0x147   :  { %710 = vmatprep.subr.bf16.mxu1 %v893_v0  ;;  %v717_v10 = vpack.c.bf16 %v372_v9, %v371_v1 }
 0x14a   :  { %712 = vmatpush3.bf16.msra.mxu1 %v711_v5 }
 0x14b   :  { %713 = vmatprep.subr.bf16.mxu1 %v893_v0 }
 0x14e   :  { %715 = vmatpush3.bf16.msra.mxu1 %v714_v8 }
 0x14f   :  { %716 = vmatprep.subr.bf16.mxu1 %v893_v0 }
 0x152   :  { %718 = vmatpush3.bf16.msra.mxu1 %v717_v10 }
 0x153   :  { %719 = vmatprep.subr.bf16.mxu1 %v893_v0 }
 0x156   :  { %721 = vmatpush3.bf16.msra.mxu1 %v720_v13 }
 0x157   :  { %722 = vmatprep.subr.bf16.mxu1 %v893_v0 }
 0x15a   :  { %724 = vmatpush3.bf16.msra.mxu1 %v723_v20 }
 0x15b   :  { %725 = vmatprep.subr.bf16.mxu1 %v893_v0 }
 0x15e   :  { %727 = vmatpush3.bf16.msra.mxu1 %v726_v23 }
 0x15f   :  { %728 = vmatprep.subr.bf16.mxu1 %v893_v0 }
 0x162   :  { %730 = vmatpush3.bf16.msra.mxu1 %v729_v26 }
 0x218   :  { %v268_v15 = vpop.f32.mrb[0].mxu1 }
 0x219   :  { %v269_v16 = vadd.f32 %v478_v14, %v268_v15  ;;  %v582_v17 = vpop.f32.mrb[1].mxu1 }
 0x21b   :  { %616 = vmatmul.mubr.f32.vlgmr.msra.gmra.mrb[2].mxu0 %v269_v16 }
 0x2ee   :  { %v360_v28 = vpop.f32.mrb[2].mxu0 }
 0x2ef   :  { %v361_v29 = vadd.f32 %v479_v27, %v360_v28  ;;  %v617_v30 = vpop.f32.mrb[3].mxu0 }
 0x2f1   :  { %744 = vtanh.f32 %v361_v29 }
 0x2fb   :  { %v745_v31 = vpop.eup %744 }
 0x2fc   :  { %651 = vmatmul.mubr.f32.vlgmr.msra.gmra.mrb[2].mxu1 %v745_v31 }
 0x3cf   :  { %v453_v33 = vpop.f32.mrb[2].mxu1 }
 0x3d0   :  { %v454_v34 = vadd.f32 %v480_v32, %v453_v33  ;;  %v652_v0 = vpop.f32.mrb[3].mxu1 }
 0x3d2   :  { %v457_v35 = vadd.f32 %v454_v34, %v269_v16 }
 0x3d4   :  { %458 = vst [vmem:[#allocation11] sm:$0xff] %v457_v35 }
 0x3d5   :  { %867 = shalt.err (!%p864_p2)
}
 0x3d6   :  { %s868_s20 = scalar_lea.hbm %s1068_s6, 128 }
 0x3d7   :  { %p869_p3 = scmp.ne.s32.totalorder %s1068_s6, %s868_s20  ;;  %p872_p4 = scmp.lt.u32.totalorder %s868_s20, %s1068_s6 }
 0x3d9   :  { %p874_p5 = pnand %p872_p4, %p869_p3 }
 0x3db   :  { %877 = shalt.err (!%p874_p5)
}
 0x3dc   :  { %468 = dma.vmem_to_hbm [thread:$0]  %s466_s16, 128, %s1068_s6, [#allocation4]  }
 0x3dd   :  { %884 = dma.done.wait [#allocation4], 128  }
 0x3de   :  { %885 = vsyncadd [#allocation4], 4294967168 }
 0x3df   :  { %472 = vsyncpa [#allocation3], 1 }
 0x3e0   :  { %473 = vsyncpa [#allocation6], 1 }
 0x3e1   :  { %474 = vsyncpa [#allocation9], 1 }
 0x3e2   :  { %475 = vsyncpa [#allocation4], 1 }

</bundles_post_ra>
